<compile_context>
chip_gen: v7x
topology: tpu7x:2x2x1
jax: 0.10.0
libtpu: 0.0.40
codegen_flags: <defaults>
</compile_context>

<pallas_src>
import functools

import jax
import jax.numpy as jnp
from jax.experimental import pallas as pl
from jax.experimental.pallas import tpu as pltpu

SUBLANE = 8


def _round_up(n, m):
    return ((n + m - 1) // m) * m


# ----------------------------- kernels ------------------------------------- #

def _mlp_forward_kernel(x_ref, w1_ref, b1_ref, w2_ref, b2_ref, out_ref):
    # Cast activations to the weight compute dtype just before the MXU dot;
    # bias add / ReLU stay on the f32 accumulator (v5e has no bf16 VPU).
    x = x_ref[...].astype(w1_ref.dtype)
    h = jnp.dot(x, w1_ref[...], preferred_element_type=jnp.float32)
    h = jnp.maximum(h + b1_ref[...], 0.0)
    logits = jnp.dot(h.astype(w2_ref.dtype), w2_ref[...],
                     preferred_element_type=jnp.float32) + b2_ref[...]
    out_ref[...] = logits.astype(out_ref.dtype)


def _mlp_sample_kernel(x_ref, u_ref, w1_ref, b1_ref, w2_ref, b2_ref,
                       logits_ref, probs_ref, *, inv_temperature):
    # --- forward pass (identical math to _mlp_forward_kernel) ---
    x = x_ref[...].astype(w1_ref.dtype)
    h = jnp.dot(x, w1_ref[...], preferred_element_type=jnp.float32)
    h = jnp.maximum(h + b1_ref[...], 0.0)
    logits = jnp.dot(h.astype(w2_ref.dtype), w2_ref[...],
                     preferred_element_type=jnp.float32) + b2_ref[...]
    logits_ref[...] = logits.astype(logits_ref.dtype)

    # --- fused Gumbel-softmax over the real action lanes only ---
    u = u_ref[...]                                    # uniform [0, 1), f32
    g = -jnp.log(-jnp.log(u + 1e-20) + 1e-20)         # Gumbel(0, 1)
    y = (logits + g) * inv_temperature
    m = jnp.max(y, axis=-1, keepdims=True)
    e = jnp.exp(y - m)
    probs = e / jnp.sum(e, axis=-1, keepdims=True)    # exact normalization
    probs_ref[...] = probs.astype(probs_ref.dtype)


# ----------------------------- wrappers ------------------------------------ #

def _tile_batch(B, block_b):
    """Pick (TB, BP): batch tile and (minimally) padded batch."""
    if block_b is None:
        block_b = 1024
    if B >= 2 * SUBLANE:
        # v7x megacore: keep >= 2 batch tiles so both TensorCores get work.
        block_b = min(block_b, _round_up(-(-B // 2), SUBLANE))
    if B <= block_b:
        return B, B                       # one tile, block dim == full dim
    TB = block_b                          # multiple of 8
    return TB, _round_up(B, TB)


def _prep_params(w1, b1, w2, b2, compute_dtype):
    """Weights in (in, out) layout, cast to the MXU compute dtype; biases f32."""
    w1c = jnp.asarray(w1, compute_dtype)
    w2c = jnp.asarray(w2, compute_dtype)
    b1r = jnp.asarray(b1, jnp.float32).reshape(1, -1)
    b2r = jnp.asarray(b2, jnp.float32).reshape(1, -1)
    return w1c, b1r, w2c, b2r


def _common_specs(TB, obs, hid, act):
    # x tile walks the batch; tiny weights/biases stay resident (constant map).
    in_specs = [
        pl.BlockSpec((TB, obs), lambda i: (i, 0)),
        pl.BlockSpec((obs, hid), lambda i: (0, 0)),
        pl.BlockSpec((1, hid), lambda i: (0, 0)),
        pl.BlockSpec((hid, act), lambda i: (0, 0)),
        pl.BlockSpec((1, act), lambda i: (0, 0)),
    ]
    out_spec = pl.BlockSpec((TB, act), lambda i: (i, 0))
    return in_specs, out_spec


def gumbel_actor_forward(x, w1, b1, w2, b2, *, compute_dtype=jnp.bfloat16,
                         block_b=None):
    """Fused MLP forward. x: (B, obs_dim). Returns logits (B, action_dim) f32."""
    B, obs = x.shape
    hid = w1.shape[1]
    act = w2.shape[1]
    w1c, b1r, w2c, b2r = _prep_params(w1, b1, w2, b2, compute_dtype)
    TB, BP = _tile_batch(B, block_b)
    xp = x if BP == B else jnp.pad(x, ((0, BP - B), (0, 0)))
    in_specs, out_spec = _common_specs(TB, obs, hid, act)

    wbytes = w1c.size * w1c.dtype.itemsize + w2c.size * w2c.dtype.itemsize \
        + (b1r.size + b2r.size) * 4
    cost = pl.CostEstimate(
        flops=2 * B * (obs * hid + hid * act),
        transcendentals=0,
        bytes_accessed=B * obs * x.dtype.itemsize + wbytes + B * act * 4)

    out = pl.pallas_call(
        _mlp_forward_kernel,
        out_shape=jax.ShapeDtypeStruct((BP, act), jnp.float32),
        grid_spec=pltpu.PrefetchScalarGridSpec(
            num_scalar_prefetch=0,
            grid=(BP // TB,),
            in_specs=in_specs,
            out_specs=out_spec,
        ),
        compiler_params=pltpu.CompilerParams(
            dimension_semantics=("parallel",)),
        cost_estimate=cost,
    )(xp, w1c, b1r, w2c, b2r)
    return out[:B]


def gumbel_actor_sample(x, w1, b1, w2, b2, key, *, temperature=1.0,
                        compute_dtype=jnp.bfloat16, block_b=None):
    """Fused forward + Gumbel-softmax sampling in a single pallas_call.

    key: jax.random PRNG key (host-side RNG, like torch.rand_like).
    Returns (logits, probs), each (B, action_dim) f32.
    """
    B, obs = x.shape
    hid = w1.shape[1]
    act = w2.shape[1]
    w1c, b1r, w2c, b2r = _prep_params(w1, b1, w2, b2, compute_dtype)
    TB, BP = _tile_batch(B, block_b)
    xp = x if BP == B else jnp.pad(x, ((0, BP - B), (0, 0)))
    u = jax.random.uniform(key, (BP, act), jnp.float32)   # true-width noise
    in_specs, out_spec = _common_specs(TB, obs, hid, act)
    # Noise tile rides along with the x tile.
    in_specs = [in_specs[0], pl.BlockSpec((TB, act), lambda i: (i, 0))] + in_specs[1:]

    wbytes = w1c.size * w1c.dtype.itemsize + w2c.size * w2c.dtype.itemsize \
        + (b1r.size + b2r.size) * 4
    cost = pl.CostEstimate(
        flops=2 * B * (obs * hid + hid * act),
        transcendentals=3 * B * act,
        bytes_accessed=(B * obs * x.dtype.itemsize + B * act * 4 + wbytes
                        + 2 * B * act * 4))

    kernel = functools.partial(_mlp_sample_kernel,
                               inv_temperature=float(1.0 / temperature))
    logits, probs = pl.pallas_call(
        kernel,
        out_shape=(jax.ShapeDtypeStruct((BP, act), jnp.float32),
                   jax.ShapeDtypeStruct((BP, act), jnp.float32)),
        grid_spec=pltpu.PrefetchScalarGridSpec(
            num_scalar_prefetch=0,
            grid=(BP // TB,),
            in_specs=in_specs,
            out_specs=[out_spec, out_spec],
        ),
        compiler_params=pltpu.CompilerParams(
            dimension_semantics=("parallel",)),
        cost_estimate=cost,
    )(xp, u, w1c, b1r, w2c, b2r)
    return logits[:B], probs[:B]


def init_params(key, obs_dim, action_dim, hidden_dim):
    """Deterministic parameter init (PyTorch Linear-style uniform bounds)."""
    k1, k2, k3, k4 = jax.random.split(key, 4)
    bound1 = 1.0 / (obs_dim ** 0.5)
    bound2 = 1.0 / (hidden_dim ** 0.5)
    # Stored as (in, out) so the kernel can do x @ W without transposing.
    w1 = jax.random.uniform(k1, (obs_dim, hidden_dim), jnp.float32, -bound1, bound1)
    b1 = jax.random.uniform(k2, (1, hidden_dim), jnp.float32, -bound1, bound1)
    w2 = jax.random.uniform(k3, (hidden_dim, action_dim), jnp.float32, -bound2, bound2)
    b2 = jax.random.uniform(k4, (1, action_dim), jnp.float32, -bound2, bound2)
    return w1, b1, w2, b2


if __name__ == "__main__":
    obs_dim, action_dim, hidden_dim = 32, 8, 32
    batch = 8
    temperature = 1.0

    key = jax.random.PRNGKey(0)
    kx, kp = jax.random.split(key)
    x = jax.random.normal(kx, (batch, obs_dim), jnp.float32)
    w1, b1, w2, b2 = init_params(kp, obs_dim, action_dim, hidden_dim)

    # forward() (logits only)
    logits = gumbel_actor_forward(x, w1, b1, w2, b2)
    jax.block_until_ready(logits)

    # fused forward + sample_gumbel_softmax()
    logits2, probs = gumbel_actor_sample(x, w1, b1, w2, b2,
                                         jax.random.PRNGKey(123),
                                         temperature=temperature)
    jax.block_until_ready((logits2, probs))

    # Reference with the same bf16-input / f32-accumulate arithmetic.
    bf = jnp.bfloat16
    h_ref = jnp.maximum(
        jnp.dot(x.astype(bf), w1.astype(bf), preferred_element_type=jnp.float32) + b1,
        0.0)
    ref = jnp.dot(h_ref.astype(bf), w2.astype(bf),
                  preferred_element_type=jnp.float32) + b2

    assert logits.shape == (batch, action_dim)
    assert jnp.allclose(logits, ref, atol=1e-3, rtol=1e-3), "logits mismatch"
    assert jnp.allclose(logits, logits2, atol=1e-5, rtol=1e-5), \
        "forward vs fused-sample logits mismatch"

    # The Gumbel uniforms come from jax.random (no bitwise torch reference), so
    # check the sampled output is a valid probability distribution.
    assert probs.shape == (batch, action_dim)
    assert bool(jnp.all(jnp.isfinite(probs))) and bool(jnp.all(probs >= 0.0))
    assert jnp.allclose(jnp.sum(probs, axis=-1), 1.0, atol=1e-5), \
        "gumbel-softmax rows do not sum to 1"

    print("KERNEL_OK")
</pallas_src>

<mosaic_0001>
module attributes {stable_mosaic.version = 11 : i64} {
  func.func @_mlp_forward_kernel(%arg0: i32, %arg1: memref<8x32xf32, #tpu.memory_space<vmem>>, %arg2: memref<32x32xbf16, #tpu.memory_space<vmem>>, %arg3: memref<1x32xf32, #tpu.memory_space<vmem>>, %arg4: memref<32x8xbf16, #tpu.memory_space<vmem>>, %arg5: memref<1x8xf32, #tpu.memory_space<vmem>>, %arg6: memref<8x8xf32, #tpu.memory_space<vmem>>) attributes {dimension_semantics = [#tpu.dimension_semantics<parallel>], iteration_bounds = array<i64: 1>, scalar_prefetch = 0 : i64, scratch_operands = 0 : i64, tpu.core_type = #tpu.core_type<tc>, window_params = [{transform_indices = @transform_0, window_bounds = array<i64: 8, 32>}, {pipeline_mode = #tpu.pipeline_mode<synchronous>, transform_indices = @transform_1, window_bounds = array<i64: 32, 32>}, {pipeline_mode = #tpu.pipeline_mode<synchronous>, transform_indices = @transform_2, window_bounds = array<i64: 1, 32>}, {pipeline_mode = #tpu.pipeline_mode<synchronous>, transform_indices = @transform_3, window_bounds = array<i64: 32, 8>}, {pipeline_mode = #tpu.pipeline_mode<synchronous>, transform_indices = @transform_4, window_bounds = array<i64: 1, 8>}, {transform_indices = @transform_5, window_bounds = array<i64: 8, 8>}]} {
    %c0 = arith.constant 0 : index
    %c0_0 = arith.constant 0 : index
    %0 = vector.load %arg1[%c0, %c0_0] : memref<8x32xf32, #tpu.memory_space<vmem>>, vector<8x32xf32>
    %1 = arith.truncf %0 : vector<8x32xf32> to vector<8x32xbf16>
    %c0_1 = arith.constant 0 : index
    %c0_2 = arith.constant 0 : index
    %2 = vector.load %arg2[%c0_1, %c0_2] : memref<32x32xbf16, #tpu.memory_space<vmem>>, vector<32x32xbf16>
    %cst = arith.constant dense<0.000000e+00> : vector<8x32xf32>
    %3 = tpu.matmul %1, %2, %cst {dimension_numbers = #tpu.dot_dimension_numbers<[1], [0], [0], [1], [0, 0, 1, 1], [], []>} : vector<8x32xbf16>, vector<32x32xbf16>, vector<8x32xf32> -> vector<8x32xf32>
    %c0_3 = arith.constant 0 : index
    %c0_4 = arith.constant 0 : index
    %4 = vector.load %arg3[%c0_3, %c0_4] : memref<1x32xf32, #tpu.memory_space<vmem>>, vector<1x32xf32>
    %5 = vector.broadcast %4 : vector<1x32xf32> to vector<8x32xf32>
    %6 = arith.addf %3, %5 : vector<8x32xf32>
    %cst_5 = arith.constant 0.000000e+00 : f32
    %7 = vector.broadcast %cst_5 : f32 to vector<8x32xf32>
    %8 = arith.maximumf %6, %7 : vector<8x32xf32>
    %9 = arith.truncf %8 : vector<8x32xf32> to vector<8x32xbf16>
    %c0_6 = arith.constant 0 : index
    %c0_7 = arith.constant 0 : index
    %10 = vector.load %arg4[%c0_6, %c0_7] : memref<32x8xbf16, #tpu.memory_space<vmem>>, vector<32x8xbf16>
    %cst_8 = arith.constant dense<0.000000e+00> : vector<8x8xf32>
    %11 = tpu.matmul %9, %10, %cst_8 {dimension_numbers = #tpu.dot_dimension_numbers<[1], [0], [0], [1], [0, 0, 1, 1], [], []>} : vector<8x32xbf16>, vector<32x8xbf16>, vector<8x8xf32> -> vector<8x8xf32>
    %c0_9 = arith.constant 0 : index
    %c0_10 = arith.constant 0 : index
    %12 = vector.load %arg5[%c0_9, %c0_10] : memref<1x8xf32, #tpu.memory_space<vmem>>, vector<1x8xf32>
    %13 = vector.broadcast %12 : vector<1x8xf32> to vector<8x8xf32>
    %14 = arith.addf %11, %13 : vector<8x8xf32>
    %c0_11 = arith.constant 0 : index
    %c0_12 = arith.constant 0 : index
    %15 = vector.load %arg6[%c0_11, %c0_12] : memref<8x8xf32, #tpu.memory_space<vmem>>, vector<8x8xf32>
    tpu.vector_store %arg6[%c0_11, %c0_12], %14 {strides = array<i32>} : memref<8x8xf32, #tpu.memory_space<vmem>>, vector<8x8xf32>,
    return
  }
  func.func @transform_0(%arg0: i32) -> (i32, i32) {
    %c0_i32 = arith.constant 0 : i32
    %c0_i32_0 = arith.constant 0 : i32
    return %arg0, %c0_i32 : i32, i32
  }
  func.func @transform_1(%arg0: i32) -> (i32, i32) {
    %c0_i32 = arith.constant 0 : i32
    %c0_i32_0 = arith.constant 0 : i32
    %c0_i32_1 = arith.constant 0 : i32
    return %c0_i32, %c0_i32_0 : i32, i32
  }
  func.func @transform_2(%arg0: i32) -> (i32, i32) {
    %c0_i32 = arith.constant 0 : i32
    %c0_i32_0 = arith.constant 0 : i32
    %c0_i32_1 = arith.constant 0 : i32
    return %c0_i32, %c0_i32_0 : i32, i32
  }
  func.func @transform_3(%arg0: i32) -> (i32, i32) {
    %c0_i32 = arith.constant 0 : i32
    %c0_i32_0 = arith.constant 0 : i32
    %c0_i32_1 = arith.constant 0 : i32
    return %c0_i32, %c0_i32_0 : i32, i32
  }
  func.func @transform_4(%arg0: i32) -> (i32, i32) {
    %c0_i32 = arith.constant 0 : i32
    %c0_i32_0 = arith.constant 0 : i32
    %c0_i32_1 = arith.constant 0 : i32
    return %c0_i32, %c0_i32_0 : i32, i32
  }
  func.func @transform_5(%arg0: i32) -> (i32, i32) {
    %c0_i32 = arith.constant 0 : i32
    %c0_i32_0 = arith.constant 0 : i32
    return %arg0, %c0_i32 : i32, i32
  }
}

</mosaic_0001>

<bundles_post_ra>
// kernel: tpu_custom_call.1
= control target key start
LH: loop header
LB: loop body
LE: loop exit
PB: predicated region body
PF: predicated region fallthrough
CT: control target
= control target key end

     0   :  { %10 = vsyncpa [#allocation3], 0  ;;  %s350_s0 = inlined_call_operand.hbm [shape: f32[8,32], index: 0, kind: input, shape index: {}]   ;;  %s351_s1 = inlined_call_operand.vmem [shape: bf16[32,32], index: 1, kind: input, shape index: {}]   ;;  %s352_s2 = inlined_call_operand.vmem [shape: f32[1,32], index: 2, kind: input, shape index: {}]   ;;  %s353_s3 = inlined_call_operand.vmem [shape: bf16[32,8], index: 3, kind: input, shape index: {}]   ;;  %s354_s4 = inlined_call_operand.vmem [shape: f32[1,8], index: 4, kind: input, shape index: {}]   ;;  %s355_s5 = inlined_call_operand.hbm [shape: f32[8,8], index: 5, kind: output, shape index: {}]  }
   0x1   :  { %11 = vsyncpa [#allocation4], 0  ;;  %s274_s18 = smov [#allocation2]   ;;  %s226_s22 = scalar_lea.hbm %s350_s0, 128 }
   0x2   :  { %s18_s19 = sshll.u32 %s274_s18, 4  ;;  %p227_p0 = scmp.ne.s32.totalorder %s350_s0, %s226_s22  ;;  %s19_s19 = int_to_ptr.vmem [resolvable:$true] %s18_s19 }
   0x3   :  { %p230_p1 = scmp.lt.u32.totalorder %s226_s22, %s350_s0 }
   0x5   :  { %p232_p2 = pnand %p230_p1, %p227_p0 }
   0x7   :  { %235 = shalt.err (!%p232_p2)
}
   0x8   :  { %s236_s27 = scalar_lea.vmem %s19_s19, 128  ;;  %p241_p4 = scmp.lt.s32.totalorder %s19_s19, %s19_s19 }
   0x9   :  { %p237_p3 = scmp.ne.s32.totalorder %s19_s19, %s236_s27  ;;  %p242_p5 = scmp.lt.s32.totalorder %s236_s27, %s236_s27 }
   0xb   :  { %p243_p6 = por %p242_p5, %p241_p4 }
   0xd   :  { %p244_p7 = pnand %p243_p6, %p237_p3 }
   0xf   :  { %247 = shalt.err (!%p244_p7)
}
  0x10   :  { %21 = dma.hbm_to_vmem [thread:$0]  %s350_s0, 128, %s19_s19, [#allocation3]  }
  0x11   :  { %270 = dma.done.wait [#allocation3], 128  }
  0x12   :  { %271 = vsyncadd [#allocation3], 4294967168  ;;  %v275_v0 = vmov 0.0   ;;  %vm276_vm0 = vmmov 0   ;;  %v222_v1 = vld [vmem:[%s351_s1] sm:$0xff]   ;;  %v223_v2 = vld [vmem:[%s351_s1 + $0x8] sm:$0xff]  }
  0x13   :  { %202 = vmatprep.subr.bf16.mxu0 %v275_v0  ;;  %206 = vmatprep.mubr.msk.bf16.mxu0 %vm276_vm0, %v275_v0  ;;  %v34_v3 = vld [vmem:[#allocation2] sm:$0xff]  ;;  %vm59_vm1 = vcmask 261120   ;;  %v225_v6 = vld [vmem:[%s353_s3 + $0x8] sm:$0xff]   ;;  %s277_s15 = smov [#allocation5]   ;;  %vm171_vm2 = vcmask 64512  }
  0x14   :  { %210 = vmatprep.subr.bf16.mxu1 %v275_v0  ;;  %214 = vmatprep.mubr.msk.bf16.mxu1 %vm276_vm0, %v275_v0  ;;  %v35_v4 = vpack.c.bf16 %v34_v3, %v34_v3  ;;  %v224_v5 = vld [vmem:[%s353_s3] sm:$0xff]   ;;  %s179_s16 = sshll.u32 %s277_s15, 4  ;;  %s180_s16 = int_to_ptr.vmem [resolvable:$true] %s179_s16 }
  0x15   :  { %203 = vmatpush3.bf16.msra.mxu0 %v222_v1  ;;  %211 = vmatpush3.bf16.msra.mxu1 %v224_v5  ;;  %v188_v7 = vld [vmem:[%s352_s2] ss:$0 sm:$0xff]  ;;  %s248_s2 = scalar_lea.vmem %s180_s16, 128  ;;  %p253_p9 = scmp.lt.s32.totalorder %s180_s16, %s180_s16 }
  0x16   :  { %204 = vmatprep.subr.bf16.mxu0 %v275_v0  ;;  %212 = vmatprep.subr.bf16.mxu1 %v275_v0  ;;  %v192_v15 = vld [vmem:[%s354_s4] ss:$0 sm:$0xff]  ;;  %p249_p8 = scmp.ne.s32.totalorder %s180_s16, %s248_s2  ;;  %p254_p10 = scmp.lt.s32.totalorder %s248_s2, %s248_s2 }
  0x18   :  { %p255_p11 = por %p254_p10, %p253_p9 }
  0x19   :  { %205 = vmatpush3.bf16.msra.mxu0 %v223_v2  ;;  %213 = vmatpush3.bf16.msra.mxu1 %v225_v6 }
  0x1a   :  { %p256_p12 = pnand %p255_p11, %p249_p8 }
  0x1c   :  { %207 = vmatmul.mubr.msk.bf16.vlgmr.msra.gmra.mrb[0].mxu0 %vm59_vm1, %v35_v4 }
  0xef   :  { %v97_v8 = vpop.f32.mrb[0].mxu0 }
  0xf0   :  { %v98_v9 = vadd.f32 %v188_v7, %v97_v8  ;;  %v208_v10 = vpop.f32.mrb[1].mxu0 }
  0xf1   :  { %v100_v11 = vpop.f32.mrb[2].mxu0 }
  0xf2   :  { %v103_v12 = vmax.f32 %v98_v9, 0.0  ;;  %v209_v13 = vpop.f32.mrb[3].mxu0 }
  0xf4   :  { %v104_v14 = vpack.c.bf16 %v103_v12, %v103_v12 }
  0xf6   :  { %215 = vmatmul.mubr.msk.bf16.vlgmr.msra.gmra.mrb[0].mxu1 %vm59_vm1, %v104_v14 }
 0x1c9   :  { %v165_v16 = vpop.f32.mrb[0].mxu1 }
 0x1ca   :  { %v166_v17 = vadd.f32 %v192_v15, %v165_v16  ;;  %v216_v18 = vpop.f32.mrb[1].mxu1 }
 0x1cb   :  { %v168_v19 = vpop.f32.mrb[2].mxu1 }
 0x1cc   :  { %v217_v20 = vpop.f32.mrb[3].mxu1  ;;  %172 = vst.msk [vmem:[#allocation5] sm:$0xff] %vm171_vm2, %v166_v17 }
 0x1cd   :  { %259 = shalt.err (!%p256_p12)
}
 0x1ce   :  { %s260_s4 = scalar_lea.hbm %s355_s5, 128 }
 0x1cf   :  { %p261_p13 = scmp.ne.s32.totalorder %s355_s5, %s260_s4  ;;  %p264_p0 = scmp.lt.u32.totalorder %s260_s4, %s355_s5 }
 0x1d1   :  { %p266_p1 = pnand %p264_p0, %p261_p13 }
 0x1d3   :  { %269 = shalt.err (!%p266_p1)
}
 0x1d4   :  { %182 = dma.vmem_to_hbm [thread:$0]  %s180_s16, 128, %s355_s5, [#allocation4]  }
 0x1d5   :  { %272 = dma.done.wait [#allocation4], 128  }
 0x1d6   :  { %273 = vsyncadd [#allocation4], 4294967168 }
 0x1d7   :  { %186 = vsyncpa [#allocation3], 1 }
 0x1d8   :  { %187 = vsyncpa [#allocation4], 1 }

</bundles_post_ra>
